<compile_context>
chip_gen: v7x
topology: tpu7x:2x2x1
jax: 0.10.0
libtpu: 0.0.40
codegen_flags: <defaults>
</compile_context>

<pallas_src>
import functools

import jax
import jax.numpy as jnp
from jax.experimental import pallas as pl
from jax.experimental.pallas import tpu as pltpu

LANES = 128
MAX_TILE_ROWS = 4096  # (4096, 128) f32 block = 2 MiB per input per buffer


def _round_up(x, m):
    return ((x + m - 1) // m) * m


def _focal_map_f32(p, g, alpha, gamma):
    """Elementwise focal map in f32 (matches the PyTorch module, incl. log2)."""
    # pt = sum over the 2-channel one-hot concat == g*p + (1-g)*(1-p)
    pt = g * p + (1.0 - g) * (1.0 - p)
    pt_clipped = jnp.clip(pt, 1e-12, 1.0)  # clip_by_tensor(pt, 1e-12, 1.0)

    one_minus_pt = 1.0 - pt
    if float(gamma) == 2.0:
        pow_term = one_minus_pt * one_minus_pt            # pure VPU multiplies
    elif float(gamma).is_integer() and float(gamma) >= 0.0:
        pow_term = one_minus_pt ** int(gamma)             # lax.integer_pow
    else:
        pow_term = jnp.power(one_minus_pt, jnp.float32(gamma))  # EUP fallback

    # NOTE: the original PyTorch module uses torch.log2, so log2 is correct.
    return (-float(alpha)) * pow_term * jnp.log2(pt_clipped)


def _focal_kernel(pred_ref, gt_ref, out_ref, *, alpha, gamma, tile_rows,
                  valid_rows, needs_mask):
    """Focal map on one (tile_rows, 128) tile + sublane partial sum."""
    p = pred_ref[...].astype(jnp.float32)
    g = gt_ref[...].astype(jnp.float32)
    focal = _focal_map_f32(p, g, alpha, gamma)

    if needs_mask:
        i = pl.program_id(0)
        last = pl.num_programs(0) - 1

        @pl.when(i != last)
        def _():
            out_ref[...] = jnp.sum(focal, axis=0).reshape(1, 1, LANES)

        @pl.when(i == last)
        def _():
            # Mask rows past the true end of the slab (input DMA of the final
            # partial block may carry unspecified data there).
            row = (jax.lax.broadcasted_iota(jnp.int32, focal.shape, 0)
                   + i * tile_rows)
            masked = jnp.where(row < valid_rows, focal, 0.0)
            out_ref[...] = jnp.sum(masked, axis=0).reshape(1, 1, LANES)
    else:
        out_ref[...] = jnp.sum(focal, axis=0).reshape(1, 1, LANES)


def focal_loss(pred, gt, alpha=0.25, gamma=2.0, size_average=True):
    """pred, gt: (N, 1, H, W) arrays in [0, 1]. Returns scalar loss (f32)."""
    assert pred.shape == gt.shape and pred.shape[1] == 1

    n_elems = int(pred.shape[0] * pred.shape[2] * pred.shape[3])

    # Free flatten; keep native dtype (kernel upcasts to f32 in-register).
    p_flat = pred.reshape(-1)
    g_flat = gt.reshape(-1)

    rows = n_elems // LANES
    rem = n_elems % LANES

    total = jnp.float32(0.0)

    # Tiny <128-element ragged tail: plain jnp in the wrapper (no full-array
    # concatenate / copy of pred and gt).
    if rem:
        p_tail = p_flat[rows * LANES:].astype(jnp.float32)
        g_tail = g_flat[rows * LANES:].astype(jnp.float32)
        total = total + jnp.sum(_focal_map_f32(p_tail, g_tail, alpha, gamma))

    if rows > 0:
        main = rows * LANES
        p_slab = (p_flat[:main] if rem else p_flat).reshape(rows, LANES)
        g_slab = (g_flat[:main] if rem else g_flat).reshape(rows, LANES)

        # Pick tile size: big blocks for DMA efficiency; split into >= 2
        # blocks when possible so a two-TC part can shard the grid.
        if rows > MAX_TILE_ROWS:
            tile_rows = MAX_TILE_ROWS
        elif rows >= 16:
            tile_rows = _round_up(pl.cdiv(rows, 2), 8)
        else:
            tile_rows = rows  # full-dim block for tiny inputs
        tile_rows = min(tile_rows, rows)
        num_blocks = pl.cdiv(rows, tile_rows)
        needs_mask = (rows % tile_rows) != 0

        kernel = functools.partial(
            _focal_kernel,
            alpha=float(alpha),
            gamma=float(gamma),
            tile_rows=int(tile_rows),
            valid_rows=int(rows),
            needs_mask=bool(needs_mask),
        )

        in_itemsize = jnp.dtype(p_slab.dtype).itemsize
        cost = pl.CostEstimate(
            flops=10 * main,
            transcendentals=main,
            bytes_accessed=int(2 * main * in_itemsize
                               + num_blocks * LANES * 4),
        )

        partials = pl.pallas_call(
            kernel,
            out_shape=jax.ShapeDtypeStruct((num_blocks, 1, LANES),
                                           jnp.float32),
            grid_spec=pltpu.PrefetchScalarGridSpec(
                num_scalar_prefetch=0,
                grid=(num_blocks,),
                in_specs=[
                    pl.BlockSpec((tile_rows, LANES), lambda i: (i, 0)),
                    pl.BlockSpec((tile_rows, LANES), lambda i: (i, 0)),
                ],
                out_specs=pl.BlockSpec((1, 1, LANES), lambda i: (i, 0, 0)),
            ),
            compiler_params=pltpu.CompilerParams(
                dimension_semantics=("parallel",)),
            cost_estimate=cost,
        )(p_slab, g_slab)

        total = total + jnp.sum(partials)  # one tiny cross-lane/block reduce

    if size_average:
        return total / jnp.float32(n_elems)
    return total


def focal_loss_ref(pred, gt, alpha=0.25, gamma=2.0, size_average=True):
    """Pure-JAX reference mirroring the PyTorch module."""
    p = pred.astype(jnp.float32)
    g = gt.astype(jnp.float32)
    pt = (g * p + (1.0 - g) * (1.0 - p))[:, 0]  # (N, H, W)
    pt_c = jnp.clip(pt, 1e-12, 1.0)
    fm = -alpha * jnp.power(1.0 - pt, gamma) * jnp.log2(pt_c)
    return fm.mean() if size_average else fm.sum()


def _check(shape, key):
    k1, k2 = jax.random.split(key)
    pred = jax.nn.sigmoid(jax.random.normal(k1, shape, jnp.float32))
    gt = (jax.random.uniform(k2, shape, jnp.float32) > 0.5).astype(jnp.float32)

    loss_mean = jax.block_until_ready(focal_loss(pred, gt, size_average=True))
    ref_mean = jax.block_until_ready(
        focal_loss_ref(pred, gt, size_average=True))
    assert jnp.allclose(loss_mean, ref_mean, rtol=1e-4, atol=1e-6), (
        shape, loss_mean, ref_mean)

    loss_sum = jax.block_until_ready(focal_loss(pred, gt, size_average=False))
    ref_sum = jax.block_until_ready(
        focal_loss_ref(pred, gt, size_average=False))
    assert jnp.allclose(loss_sum, ref_sum, rtol=1e-4, atol=1e-5), (
        shape, loss_sum, ref_sum)


if __name__ == "__main__":
    key = jax.random.PRNGKey(0)
    keys = jax.random.split(key, 3)

    # Primary shape: lane-aligned, single full-dim block.
    _check((2, 1, 16, 16), keys[0])
    # Ragged tail path (n_elems % 128 != 0): wrapper tail + kernel prefix.
    _check((2, 1, 13, 15), keys[1])
    # Partial last block path (rows % tile_rows != 0): in-kernel mask.
    _check((1, 1, 20, 128), keys[2])

    print("KERNEL_OK")
</pallas_src>

<mosaic_0001>
module attributes {stable_mosaic.version = 11 : i64} {
  func.func @_focal_kernel(%arg0: i32, %arg1: memref<4x128xf32, #tpu.memory_space<vmem>>, %arg2: memref<4x128xf32, #tpu.memory_space<vmem>>, %arg3: memref<1x1x128xf32, #tpu.memory_space<vmem>>) attributes {dimension_semantics = [#tpu.dimension_semantics<parallel>], iteration_bounds = array<i64: 1>, scalar_prefetch = 0 : i64, scratch_operands = 0 : i64, tpu.core_type = #tpu.core_type<tc>, window_params = [{transform_indices = @transform_0, window_bounds = array<i64: 4, 128>}, {transform_indices = @transform_1, window_bounds = array<i64: 4, 128>}, {transform_indices = @transform_2, window_bounds = array<i64: 1, 1, 128>}]} {
    %c0 = arith.constant 0 : index
    %c0_0 = arith.constant 0 : index
    %0 = vector.load %arg1[%c0, %c0_0] : memref<4x128xf32, #tpu.memory_space<vmem>>, vector<4x128xf32>
    %c0_1 = arith.constant 0 : index
    %c0_2 = arith.constant 0 : index
    %1 = vector.load %arg2[%c0_1, %c0_2] : memref<4x128xf32, #tpu.memory_space<vmem>>, vector<4x128xf32>
    %2 = arith.mulf %1, %0 : vector<4x128xf32>
    %cst = arith.constant 1.000000e+00 : f32
    %3 = vector.broadcast %cst : f32 to vector<4x128xf32>
    %4 = arith.subf %3, %1 : vector<4x128xf32>
    %cst_3 = arith.constant 1.000000e+00 : f32
    %5 = vector.broadcast %cst_3 : f32 to vector<4x128xf32>
    %6 = arith.subf %5, %0 : vector<4x128xf32>
    %7 = arith.mulf %4, %6 : vector<4x128xf32>
    %8 = arith.addf %2, %7 : vector<4x128xf32>
    %cst_4 = arith.constant 9.99999996E-13 : f32
    %cst_5 = arith.constant 1.000000e+00 : f32
    %9 = vector.broadcast %cst_4 : f32 to vector<4x128xf32>
    %10 = arith.maximumf %9, %8 : vector<4x128xf32>
    %11 = vector.broadcast %cst_5 : f32 to vector<4x128xf32>
    %12 = arith.minimumf %11, %10 : vector<4x128xf32>
    %cst_6 = arith.constant 1.000000e+00 : f32
    %13 = vector.broadcast %cst_6 : f32 to vector<4x128xf32>
    %14 = arith.subf %13, %8 : vector<4x128xf32>
    %15 = arith.mulf %14, %14 : vector<4x128xf32>
    %cst_7 = arith.constant -2.500000e-01 : f32
    %16 = vector.broadcast %cst_7 : f32 to vector<4x128xf32>
    %17 = arith.mulf %16, %15 : vector<4x128xf32>
    %18 = math.log %12 : vector<4x128xf32>
    %cst_8 = arith.constant 2.000000e+00 : f32
    %19 = math.log %cst_8 : f32
    %20 = vector.broadcast %19 : f32 to vector<4x128xf32>
    %21 = arith.divf %18, %20 : vector<4x128xf32>
    %22 = arith.mulf %17, %21 : vector<4x128xf32>
    %cst_9 = arith.constant dense<0.000000e+00> : vector<128xf32>
    %23 = vector.multi_reduction <add>, %22, %cst_9 [0] : vector<4x128xf32> to vector<128xf32>
    %24 = vector.shape_cast %23 : vector<128xf32> to vector<1x1x128xf32>
    %c0_10 = arith.constant 0 : index
    %c0_11 = arith.constant 0 : index
    %c0_12 = arith.constant 0 : index
    %25 = vector.load %arg3[%c0_10, %c0_11, %c0_12] : memref<1x1x128xf32, #tpu.memory_space<vmem>>, vector<1x1x128xf32>
    tpu.vector_store %arg3[%c0_10, %c0_11, %c0_12], %24 {strides = array<i32>} : memref<1x1x128xf32, #tpu.memory_space<vmem>>, vector<1x1x128xf32>,
    return
  }
  func.func @transform_0(%arg0: i32) -> (i32, i32) {
    %c0_i32 = arith.constant 0 : i32
    %c0_i32_0 = arith.constant 0 : i32
    return %arg0, %c0_i32 : i32, i32
  }
  func.func @transform_1(%arg0: i32) -> (i32, i32) {
    %c0_i32 = arith.constant 0 : i32
    %c0_i32_0 = arith.constant 0 : i32
    return %arg0, %c0_i32 : i32, i32
  }
  func.func @transform_2(%arg0: i32) -> (i32, i32, i32) {
    %c0_i32 = arith.constant 0 : i32
    %c0_i32_0 = arith.constant 0 : i32
    %c0_i32_1 = arith.constant 0 : i32
    return %arg0, %c0_i32, %c0_i32_0 : i32, i32, i32
  }
}

</mosaic_0001>

<bundles_post_ra>
// kernel: tpu_custom_call.1
= control target key start
LH: loop header
LB: loop body
LE: loop exit
PB: predicated region body
PF: predicated region fallthrough
CT: control target
= control target key end

     0   :  { %7 = vsyncpa [#allocation3], 0  ;;  %s209_s0 = inlined_call_operand.hbm [shape: f32[4,128], index: 0, kind: input, shape index: {}]   ;;  %s210_s1 = inlined_call_operand.hbm [shape: f32[4,128], index: 1, kind: input, shape index: {}]   ;;  %s211_s2 = inlined_call_operand.hbm [shape: f32[1,1,128], index: 2, kind: output, shape index: {}]  }
   0x1   :  { %8 = vsyncpa [#allocation6], 0 }
   0x2   :  { %9 = vsyncpa [#allocation4], 0  ;;  %s155_s9 = smov [#allocation2]   ;;  %s156_s11 = smov [#allocation5]  }
   0x3   :  { %s16_s10 = sshll.u32 %s155_s9, 4  ;;  %s26_s12 = sshll.u32 %s156_s11, 4  ;;  %s17_s10 = int_to_ptr.vmem [resolvable:$true] %s16_s10  ;;  %s27_s12 = int_to_ptr.vmem [resolvable:$true] %s26_s12 }
   0x4   :  { %s83_s15 = scalar_lea.hbm %s209_s0, 64 }
   0x5   :  { %p84_p0 = scmp.ne.s32.totalorder %s209_s0, %s83_s15  ;;  %p87_p1 = scmp.lt.u32.totalorder %s83_s15, %s209_s0 }
   0x7   :  { %p89_p2 = pnand %p87_p1, %p84_p0 }
   0x9   :  { %92 = shalt.err (!%p89_p2)
}
   0xa   :  { %s93_s20 = scalar_lea.vmem %s17_s10, 64  ;;  %p98_p4 = scmp.lt.s32.totalorder %s17_s10, %s17_s10 }
   0xb   :  { %p94_p3 = scmp.ne.s32.totalorder %s17_s10, %s93_s20  ;;  %p99_p5 = scmp.lt.s32.totalorder %s93_s20, %s93_s20 }
   0xd   :  { %p100_p6 = por %p99_p5, %p98_p4 }
   0xf   :  { %p101_p7 = pnand %p100_p6, %p94_p3 }
  0x11   :  { %104 = shalt.err (!%p101_p7)
}
  0x12   :  { %19 = dma.hbm_to_vmem [thread:$0]  %s209_s0, 64, %s17_s10, [#allocation3]  }
  0x13   :  { %s105_s25 = scalar_lea.hbm %s210_s1, 64 }
  0x14   :  { %p106_p8 = scmp.ne.s32.totalorder %s210_s1, %s105_s25  ;;  %p109_p9 = scmp.lt.u32.totalorder %s105_s25, %s210_s1 }
  0x16   :  { %p111_p10 = pnand %p109_p9, %p106_p8 }
  0x18   :  { %114 = shalt.err (!%p111_p10)
}
  0x19   :  { %s115_s30 = scalar_lea.vmem %s27_s12, 64  ;;  %p120_p12 = scmp.lt.s32.totalorder %s27_s12, %s27_s12 }
  0x1a   :  { %p116_p11 = scmp.ne.s32.totalorder %s27_s12, %s115_s30  ;;  %p121_p13 = scmp.lt.s32.totalorder %s115_s30, %s115_s30 }
  0x1c   :  { %p122_p0 = por %p121_p13, %p120_p12 }
  0x1e   :  { %p123_p1 = pnand %p122_p0, %p116_p11 }
  0x20   :  { %126 = shalt.err (!%p123_p1)
}
  0x21   :  { %29 = dma.hbm_to_vmem [thread:$0]  %s210_s1, 64, %s27_s12, [#allocation6]  }
  0x22   :  { %149 = dma.done.wait [#allocation3], 64  }
  0x23   :  { %150 = vsyncadd [#allocation3], 4294967232 }
  0x24   :  { %151 = dma.done.wait [#allocation6], 64  }
  0x25   :  { %152 = vsyncadd [#allocation6], 4294967232  ;;  %v36_v0 = vld [vmem:[#allocation2] sm:$0xf]  ;;  %v37_v1 = vld [vmem:[#allocation5] sm:$0xf] }
  0x26   :  { %v38_v2 = vmul.f32 %v37_v1, %v36_v0  ;;  %v39_v3 = vsub.f32 1.0, %v37_v1  ;;  %v40_v4 = vsub.f32 1.0, %v36_v0  ;;  %vm53_vm0 = vcmask 1043456   ;;  %s157_s1 = smov [#allocation7]  }
  0x27   :  { %s68_s4 = sshll.u32 %s157_s1, 4  ;;  %s69_s4 = int_to_ptr.vmem [resolvable:$true] %s68_s4 }
  0x28   :  { %v41_v5 = vmul.f32 %v40_v4, %v39_v3  ;;  %s127_s5 = scalar_lea.vmem %s69_s4, 16  ;;  %s131_s6 = scalar_lea.vmem %s69_s4, 32 }
  0x29   :  { %p128_p2 = scmp.ne.s32.totalorder %s69_s4, %s127_s5  ;;  %p132_p3 = scmp.lt.s32.totalorder %s69_s4, %s69_s4 }
  0x2a   :  { %v42_v6 = vadd.f32 %v41_v5, %v38_v2  ;;  %p133_p4 = scmp.lt.s32.totalorder %s131_s6, %s127_s5 }
  0x2c   :  { %v43_v7 = vmax.f32 %v42_v6, 1e-12  ;;  %v45_v9 = vsub.f32 1.0, %v42_v6  ;;  %p134_p5 = por %p133_p4, %p132_p3 }
  0x2e   :  { %v44_v8 = vmin.f32 %v43_v7, 1.0  ;;  %v46_v10 = vmul.f32 %v45_v9, %v45_v9  ;;  %p135_p6 = pnand %p134_p5, %p128_p2 }
  0x30   :  { %81 = vlog2.f32 %v44_v8  ;;  %v47_v12 = vmul.f32 -0.25, %v46_v10 }
  0x3a   :  { %v82_v11 = vpop.eup %81 }
  0x3b   :  { %v49_v13 = vmul.f32 0.6931472, %v82_v11 }
  0x3d   :  { %v51_v14 = vmul.f32 1.442695, %v49_v13 }
  0x3f   :  { %v52_v15 = vmul.f32 %v51_v14, %v47_v12 }
  0x41   :  { %v54_v16 = vsel %vm53_vm0, %v52_v15, 0.0 }
  0x42   :  { %v55_v17 = vrot.slane %v54_v16, 4 }
  0x44   :  { %v56_v18 = vadd.f32 %v55_v17, %v54_v16 }
  0x46   :  { %v57_v19 = vrot.slane %v56_v18, 2 }
  0x48   :  { %v58_v20 = vadd.f32 %v57_v19, %v56_v18 }
  0x4a   :  { %v59_v21 = vrot.slane %v58_v20, 1 }
  0x4c   :  { %v60_v22 = vadd.f32 %v59_v21, %v58_v20 }
  0x4e   :  { %61 = vst [vmem:[#allocation7] sm:$0x1] %v60_v22 }
  0x4f   :  { %138 = shalt.err (!%p135_p6)
}
  0x50   :  { %s139_s9 = scalar_lea.hbm %s211_s2, 16 }
  0x51   :  { %p140_p7 = scmp.ne.s32.totalorder %s211_s2, %s139_s9  ;;  %p143_p8 = scmp.lt.u32.totalorder %s139_s9, %s211_s2 }
  0x53   :  { %p145_p9 = pnand %p143_p8, %p140_p7 }
  0x55   :  { %148 = shalt.err (!%p145_p9)
}
  0x56   :  { %71 = dma.vmem_to_hbm [thread:$0]  %s69_s4, 16, %s211_s2, [#allocation4]  }
  0x57   :  { %153 = dma.done.wait [#allocation4], 16  }
  0x58   :  { %154 = vsyncadd [#allocation4], 4294967280 }
  0x59   :  { %75 = vsyncpa [#allocation3], 1 }
  0x5a   :  { %76 = vsyncpa [#allocation6], 1 }
  0x5b   :  { %77 = vsyncpa [#allocation4], 1 }

</bundles_post_ra>
